<compile_context>
chip_gen: v7x
topology: tpu7x:2x2x1
jax: 0.10.0
libtpu: 0.0.40
codegen_flags: <defaults>
</compile_context>

<pallas_src>
import functools

import jax
import jax.numpy as jnp
from jax import lax
from jax.experimental import pallas as pl
from jax.experimental.pallas import tpu as pltpu


def _domain_bn_kernel(x_ref, scale_ref, shift_ref, o_ref):
    # x_ref     : (tile_r, tile_c)  rows = flattened (n, c), cols = flattened (h, w)
    # scale_ref : (tile_r, 1)  f32  per-row fused BN scale  (gamma * rsqrt(var+eps))
    # shift_ref : (tile_r, 1)  f32  per-row fused BN shift  (beta - mean * scale)
    # o_ref     : (tile_r, tile_c)
    x = x_ref[...].astype(jnp.float32)
    o_ref[...] = (x * scale_ref[...] + shift_ref[...]).astype(o_ref.dtype)


def _largest_divisor_tile(dim, align, cap):
    """Largest multiple of `align` that divides `dim` and is <= min(cap, dim).
    `dim` must already be a multiple of `align` (guaranteed by padding)."""
    cap = max(align, min(cap, dim))
    t = (cap // align) * align
    while t >= align:
        if dim % t == 0:
            return t
        t -= align
    return align


def _vmem_budget():
    """Returns (x-block byte budget, vmem_limit_bytes) per chip generation."""
    try:
        cap = int(getattr(pltpu.get_tpu_info(), "vmem_capacity_bytes", 0))
    except Exception:
        cap = 0
    if cap >= 96 * 1024 * 1024:
        # v5e / v6e (128 MiB physical VMEM): plenty of headroom.
        return 4 * 1024 * 1024, 64 << 20
    # v7x (64 MiB physical) or unknown chip: keep resident well under 48 MiB.
    return 4 * 1024 * 1024, 48 << 20


@functools.partial(jax.jit, static_argnames=("task", "eps"))
def domain_bn_forward(x_nchw, gamma_all, beta_all, mean_all, var_all, task,
                      eps=1e-5):
    """x_nchw: (N, C, H, W); *_all: (num_tasks, C) BN params per task."""
    N, C, H, W = x_nchw.shape
    rows, cols = N * C, H * W
    itemsize = jnp.dtype(x_nchw.dtype).itemsize
    sub_align = max(8, 32 // itemsize)      # 8 for f32, 16 for bf16, 32 for int8
    lane_align = 128

    # ---- Fused per-channel parameters (tiny (C,) math, done in the wrapper) ----
    g = gamma_all[task].astype(jnp.float32)
    b = beta_all[task].astype(jnp.float32)
    m = mean_all[task].astype(jnp.float32)
    v = var_all[task].astype(jnp.float32)
    scale_c = g * lax.rsqrt(v + jnp.float32(eps))
    shift_c = b - m * scale_c

    # ---- Layout: contiguous reshape + alignment padding (lane-dense output) ----
    x2 = x_nchw.reshape(rows, cols)
    rows_p = -(-rows // sub_align) * sub_align
    cols_p = -(-cols // lane_align) * lane_align
    if rows_p != rows or cols_p != cols:
        x2 = jnp.pad(x2, ((0, rows_p - rows), (0, cols_p - cols)))

    scale = jnp.pad(jnp.tile(scale_c, N), (0, rows_p - rows)).reshape(rows_p, 1)
    shift = jnp.pad(jnp.tile(shift_c, N), (0, rows_p - rows)).reshape(rows_p, 1)

    # ---- Tile selection: byte-based, dtype-aware, chip-gated ----
    block_budget, vmem_limit = _vmem_budget()
    row_cap = max(sub_align, (2048 // itemsize) // sub_align * sub_align)
    tile_r = _largest_divisor_tile(rows_p, sub_align, row_cap)
    col_cap = max(lane_align, block_budget // (tile_r * itemsize))
    tile_c = _largest_divisor_tile(cols_p, lane_align, col_cap)

    # Ensure >= 2 tiles on a parallel axis when splittable (v7x: 2 TensorCores).
    if rows_p // tile_r == 1 and cols_p // tile_c == 1:
        if cols_p >= 2 * lane_align:
            tile_c = _largest_divisor_tile(cols_p, lane_align, cols_p // 2)
        elif rows_p >= 2 * sub_align:
            tile_r = _largest_divisor_tile(rows_p, sub_align, rows_p // 2)

    # Cols (j) innermost: param block index (i, 0) is invariant in j, so the
    # tiny param blocks are not re-fetched across the inner loop.
    grid = (rows_p // tile_r, cols_p // tile_c)

    y2 = pl.pallas_call(
        _domain_bn_kernel,
        out_shape=jax.ShapeDtypeStruct((rows_p, cols_p), x_nchw.dtype),
        grid_spec=pltpu.PrefetchScalarGridSpec(
            num_scalar_prefetch=0,
            grid=grid,
            in_specs=[
                pl.BlockSpec((tile_r, tile_c), lambda i, j: (i, j)),
                pl.BlockSpec((tile_r, 1), lambda i, j: (i, 0)),
                pl.BlockSpec((tile_r, 1), lambda i, j: (i, 0)),
            ],
            out_specs=pl.BlockSpec((tile_r, tile_c), lambda i, j: (i, j)),
        ),
        compiler_params=pltpu.CompilerParams(
            dimension_semantics=("parallel", "parallel"),
            vmem_limit_bytes=vmem_limit),
        cost_estimate=pl.CostEstimate(
            flops=2 * rows_p * cols_p,
            transcendentals=0,
            bytes_accessed=2 * rows_p * cols_p * itemsize + 2 * rows_p * 4),
    )(x2, scale, shift)

    if rows_p != rows or cols_p != cols:
        y2 = y2[:rows, :cols]
    return y2.reshape(N, C, H, W)


def _reference(x_nchw, gamma_all, beta_all, mean_all, var_all, task, eps=1e-5):
    g = gamma_all[task][None, :, None, None]
    b = beta_all[task][None, :, None, None]
    m = mean_all[task][None, :, None, None]
    v = var_all[task][None, :, None, None]
    return (x_nchw - m) * lax.rsqrt(v + eps) * g + b


if __name__ == "__main__":
    # Small deterministic config consistent with domain_bn's __init__:
    #   bns = ModuleList of len(all_tasks) deep copies of BatchNorm2d(C)
    #   forward picks bns[config_task.task].
    N, C, H, W, NUM_TASKS, TASK = 2, 4, 16, 16, 3, 1

    key = jax.random.PRNGKey(0)
    kx, kg, kb, km, kv = jax.random.split(key, 5)
    x = jax.random.normal(kx, (N, C, H, W), jnp.float32)
    gamma = 1.0 + 0.1 * jax.random.normal(kg, (NUM_TASKS, C), jnp.float32)
    beta = 0.1 * jax.random.normal(kb, (NUM_TASKS, C), jnp.float32)
    running_mean = 0.5 * jax.random.normal(km, (NUM_TASKS, C), jnp.float32)
    running_var = jax.random.uniform(kv, (NUM_TASKS, C), jnp.float32, 0.5, 1.5)

    y = domain_bn_forward(x, gamma, beta, running_mean, running_var, task=TASK)
    jax.block_until_ready(y)

    y_ref = _reference(x, gamma, beta, running_mean, running_var, TASK)
    assert y.shape == (N, C, H, W)
    assert jnp.allclose(y, y_ref, atol=1e-4, rtol=1e-4), "mismatch vs reference"

    # Extra coverage: a non-128-multiple spatial shape (exercises the padding
    # path that replaced the full-dim fallback) — still small & deterministic.
    x2 = jax.random.normal(jax.random.PRNGKey(1), (2, 4, 7, 7), jnp.float32)
    y2 = domain_bn_forward(x2, gamma, beta, running_mean, running_var, task=TASK)
    jax.block_until_ready(y2)
    y2_ref = _reference(x2, gamma, beta, running_mean, running_var, TASK)
    assert jnp.allclose(y2, y2_ref, atol=1e-4, rtol=1e-4), "mismatch (padded path)"

    print("KERNEL_OK")
</pallas_src>

<mosaic_0001>
module attributes {stable_mosaic.version = 11 : i64} {
  func.func @_domain_bn_kernel(%arg0: i32, %arg1: i32, %arg2: memref<8x128xf32, #tpu.memory_space<vmem>>, %arg3: memref<8x1xf32, #tpu.memory_space<vmem>>, %arg4: memref<8x1xf32, #tpu.memory_space<vmem>>, %arg5: memref<8x128xf32, #tpu.memory_space<vmem>>) attributes {dimension_semantics = [#tpu.dimension_semantics<parallel>, #tpu.dimension_semantics<parallel>], iteration_bounds = array<i64: 1, 2>, scalar_prefetch = 0 : i64, scratch_operands = 0 : i64, tpu.core_type = #tpu.core_type<tc>, window_params = [{transform_indices = @transform_0, window_bounds = array<i64: 8, 128>}, {transform_indices = @transform_1, window_bounds = array<i64: 8, 1>}, {transform_indices = @transform_2, window_bounds = array<i64: 8, 1>}, {transform_indices = @transform_3, window_bounds = array<i64: 8, 128>}]} {
    %c0 = arith.constant 0 : index
    %c0_0 = arith.constant 0 : index
    %0 = vector.load %arg2[%c0, %c0_0] : memref<8x128xf32, #tpu.memory_space<vmem>>, vector<8x128xf32>
    %c0_1 = arith.constant 0 : index
    %c0_2 = arith.constant 0 : index
    %1 = vector.load %arg3[%c0_1, %c0_2] : memref<8x1xf32, #tpu.memory_space<vmem>>, vector<8x1xf32>
    %2 = vector.broadcast %1 : vector<8x1xf32> to vector<8x128xf32>
    %3 = arith.mulf %0, %2 : vector<8x128xf32>
    %c0_3 = arith.constant 0 : index
    %c0_4 = arith.constant 0 : index
    %4 = vector.load %arg4[%c0_3, %c0_4] : memref<8x1xf32, #tpu.memory_space<vmem>>, vector<8x1xf32>
    %5 = vector.broadcast %4 : vector<8x1xf32> to vector<8x128xf32>
    %6 = arith.addf %3, %5 : vector<8x128xf32>
    %c0_5 = arith.constant 0 : index
    %c0_6 = arith.constant 0 : index
    %7 = vector.load %arg5[%c0_5, %c0_6] : memref<8x128xf32, #tpu.memory_space<vmem>>, vector<8x128xf32>
    tpu.vector_store %arg5[%c0_5, %c0_6], %6 {strides = array<i32>} : memref<8x128xf32, #tpu.memory_space<vmem>>, vector<8x128xf32>,
    return
  }
  func.func @transform_0(%arg0: i32, %arg1: i32) -> (i32, i32) {
    %c0_i32 = arith.constant 0 : i32
    return %arg0, %arg1 : i32, i32
  }
  func.func @transform_1(%arg0: i32, %arg1: i32) -> (i32, i32) {
    %c0_i32 = arith.constant 0 : i32
    %c0_i32_0 = arith.constant 0 : i32
    return %arg0, %c0_i32 : i32, i32
  }
  func.func @transform_2(%arg0: i32, %arg1: i32) -> (i32, i32) {
    %c0_i32 = arith.constant 0 : i32
    %c0_i32_0 = arith.constant 0 : i32
    return %arg0, %c0_i32 : i32, i32
  }
  func.func @transform_3(%arg0: i32, %arg1: i32) -> (i32, i32) {
    %c0_i32 = arith.constant 0 : i32
    return %arg0, %arg1 : i32, i32
  }
}

</mosaic_0001>

<bundles_post_ra>
// kernel: tile.18
= control target key start
LH: loop header
LB: loop body
LE: loop exit
PB: predicated region body
PF: predicated region fallthrough
CT: control target
= control target key end

     0   :  { %s22_s0 = inlined_call_operand.vmem [shape: f32[4], index: 0, kind: input, shape index: {}]   ;;  %s23_s1 = inlined_call_operand.vmem [shape: f32[2,4], index: 1, kind: output, shape index: {}]  }
   0x1   :  { %v4_v0 = vld [vmem:[%s22_s0] ss:$0 sm:$0xff] }
   0x2   :  { %5 = vst [vmem:[%s23_s1] sm:$0x3] %v4_v0 }

// kernel: domain_bn_forward.1
= control target key start
LH: loop header
LB: loop body
LE: loop exit
PB: predicated region body
PF: predicated region fallthrough
CT: control target
= control target key end

     0   :  { %s448_s12 = smov 0   ;;  %s450_s13 = smov 0   ;;  %s480_s0 = inlined_call_operand.vmem [shape: f32[8,256], index: 0, kind: input, shape index: {}]   ;;  %s481_s1 = inlined_call_operand.vmem [shape: f32[8,1], index: 1, kind: input, shape index: {}]   ;;  %s482_s2 = inlined_call_operand.vmem [shape: f32[8,1], index: 2, kind: input, shape index: {}]   ;;  %s483_s3 = inlined_call_operand.vmem [shape: f32[8,256], index: 3, kind: output, shape index: {}]  }
   0x1   :  { %s452_s14 = smov 0  }
   0x2 LB: > { %s22_s15 = sadd.s32 1, %s421_s13  ;;  %p372_p0 = scmp.ge.s32.totalorder %s425_s14, 1  ;;  %s425_s14 = sphi %s452_s14, %s13_s14   ;;  %s421_s13 = sphi %s450_s13, %s485_s13   ;;  %s417_s12 = sphi %s448_s12, %s484_s12  }
   0x3   : > { %p23_p1 = scmp.ge.s32.totalorder %s22_s15, 2  ;;  %p174_p2 = scmp.lt.s32.totalorder %s425_s14, 3 }
   0x5   : > { %s487_s15 = smov (%p23_p1, %s22_s15), 0  ;;  %p175_p3 = pnand %p372_p0, %p174_p2 }
   0x6   : > { %v237_v0 = vld [vmem:[%s481_s1] sm:$0xff] (!%p175_p3)  ;;  %v427_v1 = vmov (!%p175_p3), 0   ;;  %p214_p4 = scmp.lt.s32.totalorder (!%p175_p3), %s417_s12, 1 }
   0x7   : > { %178 = sbr.rel (%p175_p3) target bundleno = 143 (0x8f), region = 32  ;;  %402 = vset.pattern.permute.xlu0 (!%p175_p3), %v427_v1  ;;  %v244_v2 = vld [vmem:[%s482_s2] sm:$0xff] (!%p175_p3) }
   0x8   : > { %240 = vperm.xlu0 (!%p175_p3), %402, %v237_v0  }
   0xc   : > { %247 = vperm.xlu0 (!%p175_p3), %402, %v244_v2  }
   0xe   : > { %s489_s12 = smov (!%p214_p4, %s417_s12), 1 }
   0xf   : > { %s373_s20 = sshll.u32 %s489_s12, 3 }
  0x10   : > { %s219_s23 = scalar_lea.vmem %s480_s0, %s373_s20  ;;  %s235_s26 = scalar_lea.vmem %s483_s3, %s373_s20 }
  0x11   : > { %v236_v4 = vld [vmem:[%s219_s23] sm:$0xff] }
  0x87   : > { %v241_v3 = vpop.permute.xlu0 %240 }
  0x88   : > { %v243_v5 = vmul.f32 %v241_v3, %v236_v4 }
  0x8b   : > { %v248_v6 = vpop.permute.xlu0 %247 }
  0x8c   : > { %v250_v7 = vadd.f32 %v248_v6, %v243_v5 }
  0x8e   : > { %251 = vst [vmem:[%s235_s26] sm:$0xff] %v250_v7 }
  0x8f PF: > { %s13_s14 = sadd.s32 1, %s425_s14   ;;  %s484_s12 = smov %s421_s13 }
  0x90   : > { %p10_p5 = scmp.ge.s32.totalorder %s13_s14, 4   ;;  %s485_s13 = smov %s487_s15 }
  0x92   :  { %12 = sbr.rel (!%p10_p5) target bundleno = 2 (0x2), region = 68 }

</bundles_post_ra>
